<compile_context>
chip_gen: v7x
topology: tpu7x:2x2x1
jax: 0.10.0
libtpu: 0.0.40
codegen_flags: <defaults>
</compile_context>

<pallas_src>
import math
import functools

import jax
import jax.numpy as jnp
from jax.experimental import pallas as pl
from jax.experimental.pallas import tpu as pltpu

LANE = 128                       # full vreg lane width; never split it
TILE_BYTES = 2 * 1024 * 1024     # ~2 MiB per block buffer (in + out double-buffered ~ 8 MiB)

BIN_SZ = 0.005
D = 1.0
W = 0.5                          # non-default so the rotation is non-trivial


def _round_up(x, m):
    return -(-x // m) * m


def _ring_kernel(z_ref, o_ref, *, bin_sz, d, cos_a, sin_a):
    """Ring-attractor update on an interleaved [x0,y0,x1,y1,...] tile.

    Even lanes hold x, odd lanes hold y of the SAME state (pairs never straddle
    a row boundary since LANE is even).  The partner component is fetched with
    a lane rotation (XLU slot, free while HBM/VALU bound), so no wrapper-side
    de-interleave / re-interleave is needed.
    """
    z = z_ref[...].astype(jnp.float32)

    nxt = pltpu.roll(z, shift=LANE - 1, axis=1)    # lane k <- lane (k+1) % 128
    prv = pltpu.roll(z, shift=1, axis=1)           # lane k <- lane (k-1) % 128

    # Lane-parity helpers built once at (1, LANE); broadcasting handles the rest.
    lane = jax.lax.broadcasted_iota(jnp.int32, (1, LANE), 1)
    is_x = (lane & 1) == 0
    sgn_sin = jnp.where(is_x, -sin_a, sin_a)                          # (1, LANE)
    zero_out = jnp.where(is_x, bin_sz * d * cos_a, bin_sz * d * sin_a)  # (1, LANE)

    partner = jnp.where(is_x, nxt, prv)            # y for x-lanes, x for y-lanes

    r2 = z * z + partner * partner
    nz = r2 > 0.0
    inv_r = jax.lax.rsqrt(jnp.where(nz, r2, 1.0))  # EUP; safe at r == 0
    # r_tp1 / r = (r + bin_sz*(d - r)) / r = (1 - bin_sz) + bin_sz*d/r
    scale = (1.0 - bin_sz) + (bin_sz * d) * inv_r

    # x-lane: r_tp1*cos(theta+a) = scale*(x*cos_a - y*sin_a)
    # y-lane: r_tp1*sin(theta+a) = scale*(y*cos_a + x*sin_a)
    out = scale * (z * cos_a + partner * sgn_sin)

    # r == 0: torch.atan2(0, 0) == 0 -> theta_tp1 = w*bin_sz, r_tp1 = bin_sz*d
    o_ref[...] = jnp.where(nz, out, zero_out).astype(o_ref.dtype)


def ring_attractor_dynamics(z_t, bin_sz=BIN_SZ, d=D, w=W):
    assert z_t.shape[-1] == 2, "ring attractor state is 2-D (last dim == 2)"
    orig_shape = z_t.shape
    dtype = z_t.dtype
    itemsize = jnp.dtype(dtype).itemsize
    sub = max(8, 32 // itemsize)                       # min sublane multiple for dtype
    tile_rows = max(sub, TILE_BYTES // (LANE * itemsize))  # 4096 f32 / 8192 bf16

    # Interleaved flatten is a free reshape of contiguous data.
    flat = z_t.reshape(-1)
    n = flat.shape[0]

    # Pad only up to a whole lane row (<= 127 elements).  When n is already a
    # multiple of LANE there is no pad and no trailing slice (no extra HBM pass).
    n_pad = _round_up(n, LANE)
    needs_pad = n_pad != n
    if needs_pad:
        flat = jnp.pad(flat, (0, n_pad - n))
    rows = n_pad // LANE

    if rows <= sub:
        tile = rows                                   # full-extent block, always legal
    elif rows <= 2 * tile_rows:
        # >= 2 roughly equal blocks so ("parallel",) can shard across v7x's 2 TCs.
        tile = min(tile_rows, _round_up(pl.cdiv(rows, 2), sub))
    else:
        tile = tile_rows
    grid = (pl.cdiv(rows, tile),)                     # ragged last block is masked

    a = w * bin_sz
    kernel = functools.partial(
        _ring_kernel,
        bin_sz=float(bin_sz),
        d=float(d),
        cos_a=math.cos(a),
        sin_a=math.sin(a),
    )

    spec = pl.BlockSpec((tile, LANE), lambda i: (i, 0))
    # Alias only when we created a padded temporary (a genuine intermediate);
    # in the no-pad path the input is a bitcast view of the caller's array.
    io_aliases = {0: 0} if needs_pad else {}

    out = pl.pallas_call(
        kernel,
        grid=grid,
        in_specs=[spec],
        out_specs=spec,
        out_shape=jax.ShapeDtypeStruct((rows, LANE), dtype),
        input_output_aliases=io_aliases,
        compiler_params=pltpu.CompilerParams(dimension_semantics=("parallel",)),
    )(flat.reshape(rows, LANE))

    out = out.reshape(-1)
    if needs_pad:
        out = out[:n]
    return out.reshape(orig_shape)


def _reference(z_t, bin_sz=BIN_SZ, d=D, w=W):
    # Direct transcription of the PyTorch forward, in plain JAX (f32).
    z_t = z_t.astype(jnp.float32)
    r_t = jnp.sqrt(jnp.sum(z_t ** 2, axis=-1))[..., None]
    theta_t = jnp.arctan2(z_t[..., 1], z_t[..., 0])[..., None]
    r_tp1 = r_t + bin_sz * (d - r_t)
    theta_tp1 = theta_t + w * bin_sz
    return jnp.concatenate(
        [r_tp1 * jnp.cos(theta_tp1), r_tp1 * jnp.sin(theta_tp1)], axis=-1
    )


if __name__ == "__main__":
    key = jax.random.PRNGKey(0)

    # batch=2, seq=8, state dim=2 (tiny; padded single-row block)
    z_a = jax.random.normal(key, (2, 8, 2), dtype=jnp.float32)

    # odd leading dims (ragged, exercises lane padding) + a zero state to hit
    # the atan2(0, 0) branch
    z_b = jax.random.normal(jax.random.fold_in(key, 1), (4, 33, 2), dtype=jnp.float32)
    z_b = z_b.at[0, 0].set(0.0)

    # multiple-of-128 elements: no pad / no slice path, full-extent block
    z_c = jax.random.normal(jax.random.fold_in(key, 2), (4, 64, 2), dtype=jnp.float32)

    # larger case: multi-block grid (grid >= 2, exercises megacore split)
    z_d = jax.random.normal(jax.random.fold_in(key, 3), (8, 1024, 2), dtype=jnp.float32)

    for z_t, w in ((z_a, W), (z_b, W), (z_c, 0.0), (z_d, W)):
        z_tp1 = jax.block_until_ready(ring_attractor_dynamics(z_t, w=w))
        ref = _reference(z_t, w=w)
        assert z_tp1.shape == z_t.shape
        assert jnp.allclose(z_tp1, ref, atol=1e-5, rtol=1e-5), (
            f"max abs err {jnp.max(jnp.abs(z_tp1 - ref))}"
        )

    # bf16 path (dtype-scaled sublane/tile handling); looser tolerance for the
    # final bf16 cast of the output.
    z_e = jax.random.normal(jax.random.fold_in(key, 4), (4, 33, 2), dtype=jnp.bfloat16)
    z_tp1 = jax.block_until_ready(ring_attractor_dynamics(z_e))
    ref = _reference(z_e)
    assert jnp.allclose(z_tp1.astype(jnp.float32), ref, atol=5e-2, rtol=2e-2)

    print("KERNEL_OK")
</pallas_src>

<mosaic_0001>
module attributes {stable_mosaic.version = 11 : i64} {
  func.func @_ring_kernel(%arg0: i32, %arg1: memref<1x128xf32, #tpu.memory_space<vmem>>, %arg2: memref<1x128xf32, #tpu.memory_space<vmem>>) attributes {dimension_semantics = [#tpu.dimension_semantics<parallel>], iteration_bounds = array<i64: 1>, scalar_prefetch = 0 : i64, scratch_operands = 0 : i64, tpu.core_type = #tpu.core_type<tc>, window_params = [{transform_indices = @transform_0, window_bounds = array<i64: 1, 128>}, {transform_indices = @transform_1, window_bounds = array<i64: 1, 128>}]} {
    %c0 = arith.constant 0 : index
    %c0_0 = arith.constant 0 : index
    %0 = vector.load %arg1[%c0, %c0_0] : memref<1x128xf32, #tpu.memory_space<vmem>>, vector<1x128xf32>
    %c127_i32 = arith.constant 127 : i32
    %1 = tpu.dynamic_rotate %0 by %c127_i32 dim 1 : vector<1x128xf32>, i32 -> vector<1x128xf32>
    %c1_i32 = arith.constant 1 : i32
    %2 = tpu.dynamic_rotate %0 by %c1_i32 dim 1 : vector<1x128xf32>, i32 -> vector<1x128xf32>
    %3 = tpu.iota {dimensions = array<i32: 1>} : vector<1x128xi32>
    %c1_i32_1 = arith.constant 1 : i32
    %4 = vector.broadcast %c1_i32_1 : i32 to vector<1x128xi32>
    %5 = arith.andi %3, %4 : vector<1x128xi32>
    %c0_i32 = arith.constant 0 : i32
    %6 = vector.broadcast %c0_i32 : i32 to vector<1x128xi32>
    %7 = arith.cmpi eq, %5, %6 : vector<1x128xi32>
    %cst = arith.constant -0.00249999738 : f32
    %cst_2 = arith.constant 0.00249999738 : f32
    %8 = vector.broadcast %cst : f32 to vector<1x128xf32>
    %9 = vector.broadcast %cst_2 : f32 to vector<1x128xf32>
    %10 = arith.select %7, %8, %9 : vector<1x128xi1>, vector<1x128xf32>
    %cst_3 = arith.constant 0.00499998452 : f32
    %cst_4 = arith.constant 1.2499987E-5 : f32
    %11 = vector.broadcast %cst_3 : f32 to vector<1x128xf32>
    %12 = vector.broadcast %cst_4 : f32 to vector<1x128xf32>
    %13 = arith.select %7, %11, %12 : vector<1x128xi1>, vector<1x128xf32>
    %14 = arith.select %7, %1, %2 : vector<1x128xi1>, vector<1x128xf32>
    %15 = arith.mulf %0, %0 : vector<1x128xf32>
    %16 = arith.mulf %14, %14 : vector<1x128xf32>
    %17 = arith.addf %15, %16 : vector<1x128xf32>
    %cst_5 = arith.constant 0.000000e+00 : f32
    %18 = vector.broadcast %cst_5 : f32 to vector<1x128xf32>
    %19 = arith.cmpf ogt, %17, %18 : vector<1x128xf32>
    %cst_6 = arith.constant 1.000000e+00 : f32
    %20 = vector.broadcast %cst_6 : f32 to vector<1x128xf32>
    %21 = arith.select %19, %17, %20 : vector<1x128xi1>, vector<1x128xf32>
    %22 = math.rsqrt %21 : vector<1x128xf32>
    %cst_7 = arith.constant 5.000000e-03 : f32
    %23 = vector.broadcast %cst_7 : f32 to vector<1x128xf32>
    %24 = arith.mulf %23, %22 : vector<1x128xf32>
    %cst_8 = arith.constant 9.950000e-01 : f32
    %25 = vector.broadcast %cst_8 : f32 to vector<1x128xf32>
    %26 = arith.addf %25, %24 : vector<1x128xf32>
    %cst_9 = arith.constant 0.9999969 : f32
    %27 = vector.broadcast %cst_9 : f32 to vector<1x128xf32>
    %28 = arith.mulf %0, %27 : vector<1x128xf32>
    %29 = arith.mulf %14, %10 : vector<1x128xf32>
    %30 = arith.addf %28, %29 : vector<1x128xf32>
    %31 = arith.mulf %26, %30 : vector<1x128xf32>
    %32 = arith.select %19, %31, %13 : vector<1x128xi1>, vector<1x128xf32>
    %c0_10 = arith.constant 0 : index
    %c0_11 = arith.constant 0 : index
    %33 = vector.load %arg2[%c0_10, %c0_11] : memref<1x128xf32, #tpu.memory_space<vmem>>, vector<1x128xf32>
    tpu.vector_store %arg2[%c0_10, %c0_11], %32 {strides = array<i32>} : memref<1x128xf32, #tpu.memory_space<vmem>>, vector<1x128xf32>,
    return
  }
  func.func @transform_0(%arg0: i32) -> (i32, i32) {
    %c0_i32 = arith.constant 0 : i32
    %c0_i32_0 = arith.constant 0 : i32
    return %arg0, %c0_i32 : i32, i32
  }
  func.func @transform_1(%arg0: i32) -> (i32, i32) {
    %c0_i32 = arith.constant 0 : i32
    %c0_i32_0 = arith.constant 0 : i32
    return %arg0, %c0_i32 : i32, i32
  }
}

</mosaic_0001>

<bundles_post_ra>
// kernel: tpu_custom_call.1
= control target key start
LH: loop header
LB: loop body
LE: loop exit
PB: predicated region body
PF: predicated region fallthrough
CT: control target
= control target key end

     0   :  { %6 = vsyncpa [#allocation3], 0  ;;  %s170_s0 = inlined_call_operand.hbm [shape: f32[1,128], index: 0, kind: input, shape index: {}, may-alias: {0,1}]   ;;  %s171_s1 = inlined_call_operand.hbm [shape: f32[1,128], index: 1, kind: output, shape index: {}, may-alias: {0,1}]  }
   0x1   :  { %7 = vsyncpa [#allocation4], 0  ;;  %s118_s6 = smov [#allocation2]   ;;  %s70_s10 = scalar_lea.hbm %s170_s0, 16 }
   0x2   :  { %s14_s7 = sshll.u32 %s118_s6, 4  ;;  %p71_p0 = scmp.ne.s32.totalorder %s170_s0, %s70_s10  ;;  %s15_s7 = int_to_ptr.vmem [resolvable:$true] %s14_s7 }
   0x3   :  { %p74_p1 = scmp.lt.u32.totalorder %s70_s10, %s170_s0 }
   0x5   :  { %p76_p2 = pnand %p74_p1, %p71_p0 }
   0x7   :  { %79 = shalt.err (!%p76_p2)
}
   0x8   :  { %s80_s15 = scalar_lea.vmem %s15_s7, 16  ;;  %s84_s16 = scalar_lea.vmem %s15_s7, 32 }
   0x9   :  { %p81_p3 = scmp.ne.s32.totalorder %s15_s7, %s80_s15  ;;  %p85_p4 = scmp.lt.s32.totalorder %s15_s7, %s15_s7 }
   0xa   :  { %p86_p5 = scmp.lt.s32.totalorder %s84_s16, %s80_s15 }
   0xc   :  { %p87_p6 = por %p86_p5, %p85_p4 }
   0xe   :  { %p88_p7 = pnand %p87_p6, %p81_p3 }
  0x10   :  { %91 = shalt.err (!%p88_p7)
}
  0x11   :  { %17 = dma.hbm_to_vmem [thread:$0]  %s170_s0, 16, %s15_s7, [#allocation3]  }
  0x12   :  { %114 = dma.done.wait [#allocation3], 16  }
  0x13   :  { %115 = vsyncadd [#allocation3], 4294967280  ;;  %v21_v0 = vld [vmem:[#allocation2] sm:$0x1]  ;;  %s119_s19 = smov 127   ;;  %s120_s20 = smov 1   ;;  %v26_v1 = vlaneseq }
  0x14   :  { %22 = vrot.lane.b32.xlu0 %v21_v0, %s119_s19  ;;  %v33_v7 = vmul.f32 %v21_v0, %v21_v0  ;;  %v121_v12 = vmov 0.0024999974   ;;  %v41_v14 = vmul.f32 0.9999969, %v21_v0  ;;  %s122_s0 = smov [#allocation5]  }
  0x15   :  { %v27_v2 = vand.u32 127, %v26_v1  ;;  %s53_s21 = sshll.u32 %s122_s0, 4  ;;  %v123_v20 = vmov 1.2499987e-05   ;;  %s54_s21 = int_to_ptr.vmem [resolvable:$true] %s53_s21 }
  0x16   :  { %s92_s22 = scalar_lea.vmem %s54_s21, 16  ;;  %s96_s23 = scalar_lea.vmem %s54_s21, 32 }
  0x17   :  { %v28_v3 = vand.u32 1, %v27_v2  ;;  %p93_p8 = scmp.ne.s32.totalorder %s54_s21, %s92_s22  ;;  %p97_p9 = scmp.lt.s32.totalorder %s54_s21, %s54_s21 }
  0x18   :  { %24 = vrot.lane.b32.xlu0 %v21_v0, %s120_s20  ;;  %p98_p10 = scmp.lt.s32.totalorder %s96_s23, %s92_s22 }
  0x19   :  { %vm146_vm0 = vcmp.eq.s32.totalorder %v28_v3, 0 }
  0x1a   :  { %v30_v13 = vsel %vm146_vm0, -0.0024999974, %v121_v12  ;;  %v31_v21 = vsel %vm146_vm0, 0.0049999845, %v123_v20  ;;  %p99_p11 = por %p98_p10, %p97_p9 }
  0x1c   :  { %p100_p12 = pnand %p99_p11, %p93_p8 }
  0x86   :  { %v23_v4 = vpop.permute.xlu0 %22 }
  0x8a   :  { %v25_v6 = vpop.permute.xlu0 %24 }
  0x8b   :  { %v32_v8 = vsel %vm146_vm0, %v23_v4, %v25_v6 }
  0x8c   :  { %v34_v9 = vmul.f32 %v32_v8, %v32_v8  ;;  %v42_v15 = vmul.f32 %v32_v8, %v30_v13 }
  0x8e   :  { %v35_v10 = vadd.f32 %v34_v9, %v33_v7  ;;  %v43_v18 = vadd.f32 %v42_v15, %v41_v14 }
  0x90   :  { %vm36_vm1 = vcmp.gt.f32.partialorder %v35_v10, 0.0 }
  0x91   :  { %v37_v11 = vsel %vm36_vm1, %v35_v10, 1.0 }
  0x92   :  { %68 = vrsqrt.f32 %v37_v11 }
  0x9c   :  { %v69_v16 = vpop.eup %68 }
  0x9d   :  { %v39_v17 = vmul.f32 0.005, %v69_v16 }
  0x9f   :  { %v40_v19 = vadd.f32 0.995, %v39_v17 }
  0xa1   :  { %v44_v22 = vmul.f32 %v43_v18, %v40_v19 }
  0xa3   :  { %v45_v23 = vsel %vm36_vm1, %v44_v22, %v31_v21 }
  0xa4   :  { %46 = vst [vmem:[#allocation5] sm:$0x1] %v45_v23 }
  0xa5   :  { %103 = shalt.err (!%p100_p12)
}
  0xa6   :  { %s104_s26 = scalar_lea.hbm %s171_s1, 16 }
  0xa7   :  { %p105_p13 = scmp.ne.s32.totalorder %s171_s1, %s104_s26  ;;  %p108_p0 = scmp.lt.u32.totalorder %s104_s26, %s171_s1 }
  0xa9   :  { %p110_p1 = pnand %p108_p0, %p105_p13 }
  0xab   :  { %113 = shalt.err (!%p110_p1)
}
  0xac   :  { %56 = dma.vmem_to_hbm [thread:$0]  %s54_s21, 16, %s171_s1, [#allocation4]  }
  0xad   :  { %116 = dma.done.wait [#allocation4], 16  }
  0xae   :  { %117 = vsyncadd [#allocation4], 4294967280 }
  0xaf   :  { %60 = vsyncpa [#allocation3], 1 }
  0xb0   :  { %61 = vsyncpa [#allocation4], 1 }

</bundles_post_ra>
